<compile_context>
chip_gen: v6e
topology: v6e:2x2x1
jax: 0.10.0
libtpu: 0.0.40
codegen_flags: <defaults>
</compile_context>

<pallas_src>
import functools
import math

import jax
import jax.numpy as jnp
from jax import lax
from jax.experimental import pallas as pl
from jax.experimental.pallas import tpu as pltpu

_NEG_INF = -1e30  # large finite negative: avoids NaN from fully-masked padded rows


def _round_up(x, m):
    return (x + m - 1) // m * m


def _flash_attn_kernel(xq_ref, xkv_ref, wq_ref, wk_ref, wv_ref, o_ref,
                       q_sc, m_sc, l_sc, acc_sc, *, scale):
    # Per grid step:
    #   xq_ref  : (1, tq, E)   bf16  query-tile slab of the input
    #   xkv_ref : (1, tk, E)   bf16  key/value-tile slab of the input
    #   w*_ref  : (A_pad, E)   bf16  PyTorch-layout Linear weights (zero-padded rows)
    #   o_ref   : (1, tq, A_pad) f32
    #   q_sc    : (tq, A_pad) bf16 ; m_sc/l_sc: (tq, 1) f32 ; acc_sc: (tq, A_pad) f32
    qi = pl.program_id(1)
    ki = pl.program_id(2)
    tq = q_sc.shape[0]
    tk = xkv_ref.shape[1]

    # Contract the last dim of both operands (E-vs-E or A-vs-A): the MXU consumes
    # this "transposed-rhs" form directly -- no XLU transpose / VMEM copy.
    contract_last = (((1,), (1,)), ((), ()))

    @pl.when(ki == 0)
    def _init():
        m_sc[...] = jnp.full(m_sc.shape, _NEG_INF, jnp.float32)
        l_sc[...] = jnp.zeros(l_sc.shape, jnp.float32)
        acc_sc[...] = jnp.zeros(acc_sc.shape, jnp.float32)
        # Q projection once per (batch, q-tile): bf16 operands, f32 accumulate.
        q = lax.dot_general(xq_ref[0], wq_ref[...], contract_last,
                            preferred_element_type=jnp.float32)
        q_sc[...] = q.astype(jnp.bfloat16)

    @pl.when(ki <= qi)  # causal: only tiles on/below the diagonal contribute
    def _compute():
        xkv = xkv_ref[0]                                                  # (tk, E)
        k = lax.dot_general(xkv, wk_ref[...], contract_last,
                            preferred_element_type=jnp.float32).astype(jnp.bfloat16)
        v = lax.dot_general(xkv, wv_ref[...], contract_last,
                            preferred_element_type=jnp.float32).astype(jnp.bfloat16)
        # scores = (q @ k^T) * scale, f32 accumulation on the MXU.
        s = lax.dot_general(q_sc[...], k, contract_last,
                            preferred_element_type=jnp.float32) * scale   # (tq, tk)

        def _online_update(s_blk):
            m_prev = m_sc[...]
            m_new = jnp.maximum(m_prev, jnp.max(s_blk, axis=-1, keepdims=True))
            alpha = jnp.exp(m_prev - m_new)
            p = jnp.exp(s_blk - m_new)                                    # f32
            l_sc[...] = alpha * l_sc[...] + jnp.sum(p, axis=-1, keepdims=True)
            acc_sc[...] = alpha * acc_sc[...] + jnp.dot(
                p.astype(jnp.bfloat16), v, preferred_element_type=jnp.float32)
            m_sc[...] = m_new

        @pl.when(ki == qi)  # diagonal tile: build the causal mask only here
        def _diag():
            row = qi * tq + lax.broadcasted_iota(jnp.int32, (tq, tk), 0)
            col = ki * tk + lax.broadcasted_iota(jnp.int32, (tq, tk), 1)
            _online_update(jnp.where(col <= row, s, _NEG_INF))

        @pl.when(ki < qi)   # strictly-below-diagonal tile: fully unmasked, no iota/where
        def _full():
            _online_update(s)

    @pl.when(ki == pl.num_programs(2) - 1)
    def _finalize():
        # 1/l on the EUP (approx reciprocal), then one lane-dense store.
        inv_l = pl.reciprocal(l_sc[...], approx=True)
        o_ref[0] = (acc_sc[...] * inv_l).astype(o_ref.dtype)


def self_head_attention(embeds, w_query, w_key, w_value):
    """embeds: (B, T, E); w_*: PyTorch-convention nn.Linear weights of shape (A, E)."""
    B, T, E = embeds.shape
    A = w_query.shape[0]

    # Tile sizes (query tile == kv tile). Cap at 128 (MXU-native, fits scoped VMEM
    # on v5e/v6e/v7x); small T just rounds up to the 8-sublane granule.
    tile = min(128, _round_up(T, 8))
    T_pad = _round_up(T, tile)
    A_pad = _round_up(A, 128)          # lane-dense output stores / MXU column fill
    num_q = T_pad // tile
    num_kv = T_pad // tile

    x = jnp.asarray(embeds, jnp.float32)
    if T_pad != T:
        x = jnp.pad(x, ((0, 0), (0, T_pad - T), (0, 0)))
    x = x.astype(jnp.bfloat16)         # bf16 MXU operands; halves operand DMA traffic

    def _prep_w(w):
        w = jnp.asarray(w, jnp.float32)
        if A_pad != A:
            w = jnp.pad(w, ((0, A_pad - A), (0, 0)))   # zero rows -> zero output cols
        return w.astype(jnp.bfloat16)

    wq, wk, wv = _prep_w(w_query), _prep_w(w_key), _prep_w(w_value)

    scale = 1.0 / math.sqrt(float(A))  # original attention_dim (matches the module)

    kernel = functools.partial(_flash_attn_kernel, scale=scale)

    out = pl.pallas_call(
        kernel,
        out_shape=jax.ShapeDtypeStruct((B, T_pad, A_pad), jnp.float32),
        grid_spec=pltpu.PrefetchScalarGridSpec(
            num_scalar_prefetch=0,
            grid=(B, num_q, num_kv),
            in_specs=[
                # x slab for the Q tile.
                pl.BlockSpec((1, tile, E), lambda b, qi, ki: (b, qi, 0)),
                # x slab for the K/V tile; above-diagonal tiles never contribute,
                # so clamp to the diagonal -> no re-fetch on skipped iterations.
                pl.BlockSpec((1, tile, E),
                             lambda b, qi, ki: (b, jnp.minimum(ki, qi), 0)),
                # Weights: constant blocks (fetched once, kept resident).
                pl.BlockSpec((A_pad, E), lambda b, qi, ki: (0, 0)),
                pl.BlockSpec((A_pad, E), lambda b, qi, ki: (0, 0)),
                pl.BlockSpec((A_pad, E), lambda b, qi, ki: (0, 0)),
            ],
            out_specs=pl.BlockSpec((1, tile, A_pad), lambda b, qi, ki: (b, qi, 0)),
            scratch_shapes=[
                pltpu.VMEM((tile, A_pad), jnp.bfloat16),  # projected Q tile
                pltpu.VMEM((tile, 1), jnp.float32),       # running max   m
                pltpu.VMEM((tile, 1), jnp.float32),       # running denom l
                pltpu.VMEM((tile, A_pad), jnp.float32),   # output accumulator
            ],
        ),
        compiler_params=pltpu.CompilerParams(
            # batch & q-tile axes shard across TensorCores (v7x megacore);
            # kv axis is the online-softmax reduction.
            dimension_semantics=("parallel", "parallel", "arbitrary"),
        ),
    )(x, x, wq, wk, wv)

    return out[:, :T, :A]


def _reference(embeds, w_query, w_key, w_value):
    q = embeds @ w_query.T
    k = embeds @ w_key.T
    v = embeds @ w_value.T
    A = q.shape[-1]
    scores = jnp.einsum("btd,bsd->bts", q, k) / jnp.sqrt(jnp.float32(A))
    T = scores.shape[-1]
    mask = jnp.tril(jnp.ones((T, T), jnp.float32)) == 0
    scores = jnp.where(mask[None], -jnp.inf, scores)
    probs = jax.nn.softmax(scores, axis=2)
    return probs @ v


if __name__ == "__main__":
    # Small shapes consistent with the module: batch=2, seq=8, embed=32, attn=16.
    B, T, E, A = 2, 8, 32, 16

    key = jax.random.PRNGKey(0)
    k_x, k_q, k_k, k_v = jax.random.split(key, 4)

    embeds = jax.random.normal(k_x, (B, T, E), jnp.float32)
    # nn.Linear(embedded_dim, attention_dim, bias=False) weight shape: (A, E).
    bound = 1.0 / math.sqrt(E)
    w_query = jax.random.uniform(k_q, (A, E), jnp.float32, -bound, bound)
    w_key = jax.random.uniform(k_k, (A, E), jnp.float32, -bound, bound)
    w_value = jax.random.uniform(k_v, (A, E), jnp.float32, -bound, bound)

    out = self_head_attention(embeds, w_query, w_key, w_value)
    out = jax.block_until_ready(out)

    ref = _reference(embeds, w_query, w_key, w_value)
    assert out.shape == (B, T, A)
    # bf16 MXU operands + approx reciprocal => compare to the f32 reference at
    # bf16-level tolerance (still catches mask/softmax/layout bugs, which are O(0.1+)).
    assert jnp.allclose(out, ref, atol=5e-2, rtol=5e-2), "mismatch vs reference"

    print("KERNEL_OK")
</pallas_src>

<mosaic_0001>
module attributes {stable_mosaic.version = 11 : i64} {
  func.func @_flash_attn_kernel(%arg0: i32, %arg1: i32, %arg2: i32, %arg3: memref<1x8x32xbf16, #tpu.memory_space<vmem>>, %arg4: memref<1x8x32xbf16, #tpu.memory_space<vmem>>, %arg5: memref<128x32xbf16, #tpu.memory_space<vmem>>, %arg6: memref<128x32xbf16, #tpu.memory_space<vmem>>, %arg7: memref<128x32xbf16, #tpu.memory_space<vmem>>, %arg8: memref<1x8x128xf32, #tpu.memory_space<vmem>>, %arg9: memref<8x128xbf16, #tpu.memory_space<vmem>>, %arg10: memref<8x1xf32, #tpu.memory_space<vmem>>, %arg11: memref<8x1xf32, #tpu.memory_space<vmem>>, %arg12: memref<8x128xf32, #tpu.memory_space<vmem>>) attributes {dimension_semantics = [#tpu.dimension_semantics<parallel>, #tpu.dimension_semantics<parallel>, #tpu.dimension_semantics<arbitrary>], iteration_bounds = array<i64: 2, 1, 1>, scalar_prefetch = 0 : i64, scratch_operands = 4 : i64, tpu.core_type = #tpu.core_type<tc>, window_params = [{transform_indices = @transform_0, window_bounds = array<i64: 1, 8, 32>}, {transform_indices = @transform_1, window_bounds = array<i64: 1, 8, 32>}, {pipeline_mode = #tpu.pipeline_mode<synchronous>, transform_indices = @transform_2, window_bounds = array<i64: 128, 32>}, {pipeline_mode = #tpu.pipeline_mode<synchronous>, transform_indices = @transform_3, window_bounds = array<i64: 128, 32>}, {pipeline_mode = #tpu.pipeline_mode<synchronous>, transform_indices = @transform_4, window_bounds = array<i64: 128, 32>}, {transform_indices = @transform_5, window_bounds = array<i64: 1, 8, 128>}]} {
    %c0_i32 = arith.constant 0 : i32
    %0 = arith.cmpi eq, %arg2, %c0_i32 : i32
    %1 = arith.extui %0 : i1 to i32
    %c0_i32_0 = arith.constant 0 : i32
    %2 = arith.cmpi ne, %1, %c0_i32_0 : i32
    scf.if %2 {
      %cst = arith.constant -1.000000e+30 : f32
      %9 = vector.broadcast %cst : f32 to vector<8x1xf32>
      %c0 = arith.constant 0 : index
      %c0_4 = arith.constant 0 : index
      %10 = vector.load %arg10[%c0, %c0_4] : memref<8x1xf32, #tpu.memory_space<vmem>>, vector<8x1xf32>
      tpu.vector_store %arg10[%c0, %c0_4], %9 {strides = array<i32>} : memref<8x1xf32, #tpu.memory_space<vmem>>, vector<8x1xf32>,
      %cst_5 = arith.constant 0.000000e+00 : f32
      %11 = vector.broadcast %cst_5 : f32 to vector<8x1xf32>
      %c0_6 = arith.constant 0 : index
      %c0_7 = arith.constant 0 : index
      %12 = vector.load %arg11[%c0_6, %c0_7] : memref<8x1xf32, #tpu.memory_space<vmem>>, vector<8x1xf32>
      tpu.vector_store %arg11[%c0_6, %c0_7], %11 {strides = array<i32>} : memref<8x1xf32, #tpu.memory_space<vmem>>, vector<8x1xf32>,
      %cst_8 = arith.constant 0.000000e+00 : f32
      %13 = vector.broadcast %cst_8 : f32 to vector<8x128xf32>
      %c0_9 = arith.constant 0 : index
      %c0_10 = arith.constant 0 : index
      %14 = vector.load %arg12[%c0_9, %c0_10] : memref<8x128xf32, #tpu.memory_space<vmem>>, vector<8x128xf32>
      tpu.vector_store %arg12[%c0_9, %c0_10], %13 {strides = array<i32>} : memref<8x128xf32, #tpu.memory_space<vmem>>, vector<8x128xf32>,
      %c0_11 = arith.constant 0 : index
      %c0_12 = arith.constant 0 : index
      %c0_13 = arith.constant 0 : index
      %15 = vector.load %arg3[%c0_11, %c0_12, %c0_13] : memref<1x8x32xbf16, #tpu.memory_space<vmem>>, vector<1x8x32xbf16>
      %16 = vector.shape_cast %15 : vector<1x8x32xbf16> to vector<8x32xbf16>
      %c0_14 = arith.constant 0 : index
      %c0_15 = arith.constant 0 : index
      %17 = vector.load %arg5[%c0_14, %c0_15] : memref<128x32xbf16, #tpu.memory_space<vmem>>, vector<128x32xbf16>
      %cst_16 = arith.constant dense<0.000000e+00> : vector<8x128xf32>
      %18 = tpu.matmul %16, %17, %cst_16 {dimension_numbers = #tpu.dot_dimension_numbers<[1], [1], [0], [0], [0, 0, 1, 0], [], []>} : vector<8x32xbf16>, vector<128x32xbf16>, vector<8x128xf32> -> vector<8x128xf32>
      %19 = arith.truncf %18 : vector<8x128xf32> to vector<8x128xbf16>
      %c0_17 = arith.constant 0 : index
      %c0_18 = arith.constant 0 : index
      %20 = vector.load %arg9[%c0_17, %c0_18] : memref<8x128xbf16, #tpu.memory_space<vmem>>, vector<8x128xbf16>
      tpu.vector_store %arg9[%c0_17, %c0_18], %19 {strides = array<i32>} : memref<8x128xbf16, #tpu.memory_space<vmem>>, vector<8x128xbf16>,
    } else {
    }
    %3 = arith.cmpi sle, %arg2, %arg1 : i32
    %4 = arith.extui %3 : i1 to i32
    %c0_i32_1 = arith.constant 0 : i32
    %5 = arith.cmpi ne, %4, %c0_i32_1 : i32
    scf.if %5 {
      %c0 = arith.constant 0 : index
      %c0_4 = arith.constant 0 : index
      %c0_5 = arith.constant 0 : index
      %9 = vector.load %arg4[%c0, %c0_4, %c0_5] : memref<1x8x32xbf16, #tpu.memory_space<vmem>>, vector<1x8x32xbf16>
      %10 = vector.shape_cast %9 : vector<1x8x32xbf16> to vector<8x32xbf16>
      %c0_6 = arith.constant 0 : index
      %c0_7 = arith.constant 0 : index
      %11 = vector.load %arg6[%c0_6, %c0_7] : memref<128x32xbf16, #tpu.memory_space<vmem>>, vector<128x32xbf16>
      %cst = arith.constant dense<0.000000e+00> : vector<8x128xf32>
      %12 = tpu.matmul %10, %11, %cst {dimension_numbers = #tpu.dot_dimension_numbers<[1], [1], [0], [0], [0, 0, 1, 0], [], []>} : vector<8x32xbf16>, vector<128x32xbf16>, vector<8x128xf32> -> vector<8x128xf32>
      %13 = arith.truncf %12 : vector<8x128xf32> to vector<8x128xbf16>
      %c0_8 = arith.constant 0 : index
      %c0_9 = arith.constant 0 : index
      %14 = vector.load %arg7[%c0_8, %c0_9] : memref<128x32xbf16, #tpu.memory_space<vmem>>, vector<128x32xbf16>
      %cst_10 = arith.constant dense<0.000000e+00> : vector<8x128xf32>
      %15 = tpu.matmul %10, %14, %cst_10 {dimension_numbers = #tpu.dot_dimension_numbers<[1], [1], [0], [0], [0, 0, 1, 0], [], []>} : vector<8x32xbf16>, vector<128x32xbf16>, vector<8x128xf32> -> vector<8x128xf32>
      %16 = arith.truncf %15 : vector<8x128xf32> to vector<8x128xbf16>
      %c0_11 = arith.constant 0 : index
      %c0_12 = arith.constant 0 : index
      %17 = vector.load %arg9[%c0_11, %c0_12] : memref<8x128xbf16, #tpu.memory_space<vmem>>, vector<8x128xbf16>
      %cst_13 = arith.constant dense<0.000000e+00> : vector<8x8xf32>
      %18 = tpu.matmul %17, %13, %cst_13 {dimension_numbers = #tpu.dot_dimension_numbers<[1], [1], [0], [0], [0, 0, 1, 0], [], []>} : vector<8x128xbf16>, vector<8x128xbf16>, vector<8x8xf32> -> vector<8x8xf32>
      %cst_14 = arith.constant 2.500000e-01 : f32
      %19 = vector.broadcast %cst_14 : f32 to vector<8x8xf32>
      %20 = arith.mulf %18, %19 : vector<8x8xf32>
      %21 = arith.cmpi eq, %arg2, %arg1 : i32
      %22 = arith.extui %21 : i1 to i32
      %c0_i32_15 = arith.constant 0 : i32
      %23 = arith.cmpi ne, %22, %c0_i32_15 : i32
      scf.if %23 {
        %c8_i32 = arith.constant 8 : i32
        %27 = arith.muli %arg1, %c8_i32 : i32
        %28 = tpu.iota {dimensions = array<i32: 0>} : vector<8x8xi32>
        %29 = vector.broadcast %27 : i32 to vector<8x8xi32>
        %30 = arith.addi %29, %28 : vector<8x8xi32>
        %c8_i32_17 = arith.constant 8 : i32
        %31 = arith.muli %arg2, %c8_i32_17 : i32
        %32 = tpu.iota {dimensions = array<i32: 1>} : vector<8x8xi32>
        %33 = vector.broadcast %31 : i32 to vector<8x8xi32>
        %34 = arith.addi %33, %32 : vector<8x8xi32>
        %35 = arith.cmpi sle, %34, %30 : vector<8x8xi32>
        %cst_18 = arith.constant -1.000000e+30 : f32
        %36 = vector.broadcast %cst_18 : f32 to vector<8x8xf32>
        %37 = arith.select %35, %20, %36 : vector<8x8xi1>, vector<8x8xf32>
        %c0_19 = arith.constant 0 : index
        %c0_20 = arith.constant 0 : index
        %38 = vector.load %arg10[%c0_19, %c0_20] : memref<8x1xf32, #tpu.memory_space<vmem>>, vector<8x1xf32>
        %cst_21 = arith.constant dense<0xFF800000> : vector<8xf32>
        %39 = vector.multi_reduction <maximumf>, %37, %cst_21 [1] : vector<8x8xf32> to vector<8xf32>
        %40 = vector.shape_cast %39 : vector<8xf32> to vector<8x1xf32>
        %41 = arith.maximumf %38, %40 : vector<8x1xf32>
        %42 = arith.subf %38, %41 : vector<8x1xf32>
        %43 = math.exp %42 : vector<8x1xf32>
        %44 = vector.broadcast %41 : vector<8x1xf32> to vector<8x8xf32>
        %45 = arith.subf %37, %44 : vector<8x8xf32>
        %46 = math.exp %45 : vector<8x8xf32>
        %c0_22 = arith.constant 0 : index
        %c0_23 = arith.constant 0 : index
        %47 = vector.load %arg11[%c0_22, %c0_23] : memref<8x1xf32, #tpu.memory_space<vmem>>, vector<8x1xf32>
        %48 = arith.mulf %43, %47 : vector<8x1xf32>
        %cst_24 = arith.constant dense<0.000000e+00> : vector<8xf32>
        %49 = vector.multi_reduction <add>, %46, %cst_24 [1] : vector<8x8xf32> to vector<8xf32>
        %50 = vector.shape_cast %49 : vector<8xf32> to vector<8x1xf32>
        %51 = arith.addf %48, %50 : vector<8x1xf32>
        %c0_25 = arith.constant 0 : index
        %c0_26 = arith.constant 0 : index
        %52 = vector.load %arg11[%c0_25, %c0_26] : memref<8x1xf32, #tpu.memory_space<vmem>>, vector<8x1xf32>
        tpu.vector_store %arg11[%c0_25, %c0_26], %51 {strides = array<i32>} : memref<8x1xf32, #tpu.memory_space<vmem>>, vector<8x1xf32>,
        %c0_27 = arith.constant 0 : index
        %c0_28 = arith.constant 0 : index
        %53 = vector.load %arg12[%c0_27, %c0_28] : memref<8x128xf32, #tpu.memory_space<vmem>>, vector<8x128xf32>
        %54 = vector.broadcast %43 : vector<8x1xf32> to vector<8x128xf32>
        %55 = arith.mulf %54, %53 : vector<8x128xf32>
        %56 = arith.truncf %46 : vector<8x8xf32> to vector<8x8xbf16>
        %cst_29 = arith.constant dense<0.000000e+00> : vector<8x128xf32>
        %57 = tpu.matmul %56, %16, %cst_29 {dimension_numbers = #tpu.dot_dimension_numbers<[1], [0], [0], [1], [0, 0, 1, 1], [], []>} : vector<8x8xbf16>, vector<8x128xbf16>, vector<8x128xf32> -> vector<8x128xf32>
        %58 = arith.addf %55, %57 : vector<8x128xf32>
        %c0_30 = arith.constant 0 : index
        %c0_31 = arith.constant 0 : index
        %59 = vector.load %arg12[%c0_30, %c0_31] : memref<8x128xf32, #tpu.memory_space<vmem>>, vector<8x128xf32>
        tpu.vector_store %arg12[%c0_30, %c0_31], %58 {strides = array<i32>} : memref<8x128xf32, #tpu.memory_space<vmem>>, vector<8x128xf32>,
        %c0_32 = arith.constant 0 : index
        %c0_33 = arith.constant 0 : index
        %60 = vector.load %arg10[%c0_32, %c0_33] : memref<8x1xf32, #tpu.memory_space<vmem>>, vector<8x1xf32>
        tpu.vector_store %arg10[%c0_32, %c0_33], %41 {strides = array<i32>} : memref<8x1xf32, #tpu.memory_space<vmem>>, vector<8x1xf32>,
      } else {
      }
      %24 = arith.cmpi slt, %arg2, %arg1 : i32
      %25 = arith.extui %24 : i1 to i32
      %c0_i32_16 = arith.constant 0 : i32
      %26 = arith.cmpi ne, %25, %c0_i32_16 : i32
      scf.if %26 {
        %c0_17 = arith.constant 0 : index
        %c0_18 = arith.constant 0 : index
        %27 = vector.load %arg10[%c0_17, %c0_18] : memref<8x1xf32, #tpu.memory_space<vmem>>, vector<8x1xf32>
        %cst_19 = arith.constant dense<0xFF800000> : vector<8xf32>
        %28 = vector.multi_reduction <maximumf>, %20, %cst_19 [1] : vector<8x8xf32> to vector<8xf32>
        %29 = vector.shape_cast %28 : vector<8xf32> to vector<8x1xf32>
        %30 = arith.maximumf %27, %29 : vector<8x1xf32>
        %31 = arith.subf %27, %30 : vector<8x1xf32>
        %32 = math.exp %31 : vector<8x1xf32>
        %33 = vector.broadcast %30 : vector<8x1xf32> to vector<8x8xf32>
        %34 = arith.subf %20, %33 : vector<8x8xf32>
        %35 = math.exp %34 : vector<8x8xf32>
        %c0_20 = arith.constant 0 : index
        %c0_21 = arith.constant 0 : index
        %36 = vector.load %arg11[%c0_20, %c0_21] : memref<8x1xf32, #tpu.memory_space<vmem>>, vector<8x1xf32>
        %37 = arith.mulf %32, %36 : vector<8x1xf32>
        %cst_22 = arith.constant dense<0.000000e+00> : vector<8xf32>
        %38 = vector.multi_reduction <add>, %35, %cst_22 [1] : vector<8x8xf32> to vector<8xf32>
        %39 = vector.shape_cast %38 : vector<8xf32> to vector<8x1xf32>
        %40 = arith.addf %37, %39 : vector<8x1xf32>
        %c0_23 = arith.constant 0 : index
        %c0_24 = arith.constant 0 : index
        %41 = vector.load %arg11[%c0_23, %c0_24] : memref<8x1xf32, #tpu.memory_space<vmem>>, vector<8x1xf32>
        tpu.vector_store %arg11[%c0_23, %c0_24], %40 {strides = array<i32>} : memref<8x1xf32, #tpu.memory_space<vmem>>, vector<8x1xf32>,
        %c0_25 = arith.constant 0 : index
        %c0_26 = arith.constant 0 : index
        %42 = vector.load %arg12[%c0_25, %c0_26] : memref<8x128xf32, #tpu.memory_space<vmem>>, vector<8x128xf32>
        %43 = vector.broadcast %32 : vector<8x1xf32> to vector<8x128xf32>
        %44 = arith.mulf %43, %42 : vector<8x128xf32>
        %45 = arith.truncf %35 : vector<8x8xf32> to vector<8x8xbf16>
        %cst_27 = arith.constant dense<0.000000e+00> : vector<8x128xf32>
        %46 = tpu.matmul %45, %16, %cst_27 {dimension_numbers = #tpu.dot_dimension_numbers<[1], [0], [0], [1], [0, 0, 1, 1], [], []>} : vector<8x8xbf16>, vector<8x128xbf16>, vector<8x128xf32> -> vector<8x128xf32>
        %47 = arith.addf %44, %46 : vector<8x128xf32>
        %c0_28 = arith.constant 0 : index
        %c0_29 = arith.constant 0 : index
        %48 = vector.load %arg12[%c0_28, %c0_29] : memref<8x128xf32, #tpu.memory_space<vmem>>, vector<8x128xf32>
        tpu.vector_store %arg12[%c0_28, %c0_29], %47 {strides = array<i32>} : memref<8x128xf32, #tpu.memory_space<vmem>>, vector<8x128xf32>,
        %c0_30 = arith.constant 0 : index
        %c0_31 = arith.constant 0 : index
        %49 = vector.load %arg10[%c0_30, %c0_31] : memref<8x1xf32, #tpu.memory_space<vmem>>, vector<8x1xf32>
        tpu.vector_store %arg10[%c0_30, %c0_31], %30 {strides = array<i32>} : memref<8x1xf32, #tpu.memory_space<vmem>>, vector<8x1xf32>,
      } else {
      }
    } else {
    }
    %c0_i32_2 = arith.constant 0 : i32
    %6 = arith.cmpi eq, %arg2, %c0_i32_2 : i32
    %7 = arith.extui %6 : i1 to i32
    %c0_i32_3 = arith.constant 0 : i32
    %8 = arith.cmpi ne, %7, %c0_i32_3 : i32
    scf.if %8 {
      %c0 = arith.constant 0 : index
      %c0_4 = arith.constant 0 : index
      %9 = vector.load %arg11[%c0, %c0_4] : memref<8x1xf32, #tpu.memory_space<vmem>>, vector<8x1xf32>
      %10 = tpu.reciprocal %9 {approx = true} : vector<8x1xf32> -> vector<8x1xf32>
      %c0_5 = arith.constant 0 : index
      %c0_6 = arith.constant 0 : index
      %11 = vector.load %arg12[%c0_5, %c0_6] : memref<8x128xf32, #tpu.memory_space<vmem>>, vector<8x128xf32>
      %12 = vector.broadcast %10 : vector<8x1xf32> to vector<8x128xf32>
      %13 = arith.mulf %11, %12 : vector<8x128xf32>
      %c0_7 = arith.constant 0 : index
      %c0_8 = arith.constant 0 : index
      %c0_9 = arith.constant 0 : index
      %14 = vector.load %arg8[%c0_7, %c0_8, %c0_9] : memref<1x8x128xf32, #tpu.memory_space<vmem>>, vector<1x8x128xf32>
      %15 = vector.shape_cast %14 : vector<1x8x128xf32> to vector<8x128xf32>
      %16 = vector.shape_cast %13 : vector<8x128xf32> to vector<1x8x128xf32>
      tpu.vector_store %arg8[%c0_7, %c0_8, %c0_9], %16 {strides = array<i32>} : memref<1x8x128xf32, #tpu.memory_space<vmem>>, vector<1x8x128xf32>,
    } else {
    }
    return
  }
  func.func @transform_0(%arg0: i32, %arg1: i32, %arg2: i32) -> (i32, i32, i32) {
    %c0_i32 = arith.constant 0 : i32
    %c0_i32_0 = arith.constant 0 : i32
    return %arg0, %arg1, %c0_i32 : i32, i32, i32
  }
  func.func @transform_1(%arg0: i32, %arg1: i32, %arg2: i32) -> (i32, i32, i32) {
    %0 = arith.minsi %arg2, %arg1 : i32
    %c0_i32 = arith.constant 0 : i32
    %c0_i32_0 = arith.constant 0 : i32
    return %arg0, %0, %c0_i32 : i32, i32, i32
  }
  func.func @transform_2(%arg0: i32, %arg1: i32, %arg2: i32) -> (i32, i32) {
    %c0_i32 = arith.constant 0 : i32
    %c0_i32_0 = arith.constant 0 : i32
    %c0_i32_1 = arith.constant 0 : i32
    return %c0_i32, %c0_i32_0 : i32, i32
  }
  func.func @transform_3(%arg0: i32, %arg1: i32, %arg2: i32) -> (i32, i32) {
    %c0_i32 = arith.constant 0 : i32
    %c0_i32_0 = arith.constant 0 : i32
    %c0_i32_1 = arith.constant 0 : i32
    return %c0_i32, %c0_i32_0 : i32, i32
  }
  func.func @transform_4(%arg0: i32, %arg1: i32, %arg2: i32) -> (i32, i32) {
    %c0_i32 = arith.constant 0 : i32
    %c0_i32_0 = arith.constant 0 : i32
    %c0_i32_1 = arith.constant 0 : i32
    return %c0_i32, %c0_i32_0 : i32, i32
  }
  func.func @transform_5(%arg0: i32, %arg1: i32, %arg2: i32) -> (i32, i32, i32) {
    %c0_i32 = arith.constant 0 : i32
    %c0_i32_0 = arith.constant 0 : i32
    return %arg0, %arg1, %c0_i32 : i32, i32, i32
  }
}

</mosaic_0001>

<bundles_post_ra>
// kernel: tpu_custom_call.1
= control target key start
LH: loop header
LB: loop body
LE: loop exit
PB: predicated region body
PF: predicated region fallthrough
CT: control target
= control target key end

     0   :  { %10 = vsyncpa [#allocation7], 0  ;;  %s1619_s0 = inlined_call_operand.vmem [shape: bf16[2,8,32], index: 0, kind: input, shape index: {}]   ;;  %s1620_s1 = inlined_call_operand.vmem [shape: bf16[2,8,32], index: 1, kind: input, shape index: {}]   ;;  %s1621_s2 = inlined_call_operand.vmem [shape: bf16[128,32], index: 2, kind: input, shape index: {}]   ;;  %s1622_s3 = inlined_call_operand.vmem [shape: bf16[128,32], index: 3, kind: input, shape index: {}]   ;;  %s1623_s4 = inlined_call_operand.vmem [shape: bf16[128,32], index: 4, kind: input, shape index: {}]   ;;  %s1624_s5 = inlined_call_operand.hbm [shape: f32[2,8,128], index: 5, kind: output, shape index: {}]  }
   0x1   :  { %12 = vsyncpa [#allocation7 + $0x1], 0  ;;  %s1374_s18 = smov 0   ;;  %s1376_s19 = smov 0  }
   0x2   :  { %s1378_s20 = smov 0   ;;  %s1380_s21 = smov 0  }
   0x3   :  { %s1382_s22 = smov 0   ;;  %s1384_s23 = smov 0  }
   0x4 LB: > { %s1026_s24 = sadd.s32 4294967295, %s1337_s23   ;;  %s1027_s25 = sadd.s32 4294967294, %s1337_s23   ;;  %s1337_s23 = sphi %s1384_s23, %s18_s23   ;;  %s1333_s22 = sphi %s1382_s22, %s1631_s22   ;;  %s1329_s21 = sphi %s1380_s21, %s1630_s21   ;;  %s1325_s20 = sphi %s1378_s20, %s1629_s20   ;;  %s1321_s19 = sphi %s1376_s19, %s1628_s19   ;;  %s1317_s18 = sphi %s1374_s18, %s1627_s18  }
   0x5   : > { %s37_s26 = sadd.s32 1, %s1333_s22  ;;  %s169_s27 = sadd.s32 1, %s1325_s20 }
   0x6   : > { %p39_p0 = scmp.ge.s32.totalorder %s37_s26, 2  ;;  %p179_p1 = scmp.ne.s32.totalorder %s1325_s20, %s1321_s19 }
   0x7   : > { %p180_p2 = scmp.eq.s32.totalorder %s1026_s24, 1  ;;  %p185_p3 = scmp.ne.s32.totalorder %s1321_s19, %s1317_s18 }
   0x8   : > { %s1633_s26 = smov (%p39_p0, %s37_s26), 0  ;;  %p186_p5 = scmp.eq.s32.totalorder %s1027_s25, 1 }
   0x9   : > { %p1414_p4 = por %p180_p2, %p179_p1  ;;  %s164_s29 = ssub.s32 %s1333_s22, %s1633_s26 }
   0xa   : > { %p1030_p6 = scmp.ge.s32.totalorder %s1337_s23, 1  ;;  %p167_p7 = scmp.eq.s32.totalorder %s164_s29, 0 }
   0xb   : > { %p1421_p8 = por %p186_p5, %p185_p3  ;;  %p237_p9 = scmp.lt.s32.totalorder %s1337_s23, 3 }
   0xc   : > { %s1427_s6 = scalar_select %p167_p7, %s1325_s20, %s169_s27  }
   0xd   : > { %p238_p10 = pnand %p1030_p6, %p237_p9 }
   0xe   : > { %p276_p11 = scmp.lt.s32.totalorder (!%p238_p10), %s1329_s21, 1  ;;  %s273_s24 = sand.u32 (!%p238_p10), 1, %s1321_s19  }
   0xf   : > { %241 = sbr.rel (%p238_p10) target bundleno = 1069 (0x42d), region = 40  ;;  %s1031_s25 = sshll.u32 (!%p238_p10), %s273_s24, 3 }
  0x10   : > { %s1064_s27 = sshll.u32 (!%p238_p10), %s1329_s21, 7  ;;  %s275_s29 = scalar_lea.vmem (!%p238_p10), [#allocation6], %s1031_s25 }
  0x11   : > { %s937_s7 = sshll.u32 (!%p238_p10), %s275_s29, 4  ;;  %s923_s11 = scalar_lea.sflag (!%p238_p10), [#allocation7], %s273_s24  ;;  %s938_s7 = int_to_ptr.vmem [resolvable:$true] %s937_s7 }
  0x12   : > { %s1261_s12 = scalar_lea.vmem (!%p238_p10), %s938_s7, 128 }
  0x13   : > { %p1262_p12 = scmp.ne.s32.totalorder (!%p238_p10), %s938_s7, %s1261_s12 }
  0x14   : > { %v1231_v0 = vld [vmem:[%s1621_s2 + $0x38] sm:$0xff]   ;;  %v1339_v1 = vmov 0.0   ;;  %vm360_vm0 = vcmask 261120   ;;  %v1233_v5 = vld [vmem:[%s1621_s2 + $0x30] sm:$0xff]   ;;  %v1235_v9 = vld [vmem:[%s1621_s2 + $0x28] sm:$0xff]   ;;  %vm1340_vm1 = vmmov 0   ;;  %v728_v63 = vlaneseq }
  0x15   : > { %1098 = vmatprep.subr.bf16.mxu0 %v1339_v1  ;;  %1118 = vmatprep.subr.bf16.mxu1 %v1339_v1  ;;  %v1232_v2 = vld [vmem:[%s1622_s3 + $0x38] sm:$0xff]   ;;  %v386_v3 = vsel %vm360_vm0, %v1231_v0, 0  ;;  %v1234_v6 = vld [vmem:[%s1622_s3 + $0x30] sm:$0xff]   ;;  %v383_v7 = vsel %vm360_vm0, %v1233_v5, 0  ;;  %v1236_v10 = vld [vmem:[%s1622_s3 + $0x28] sm:$0xff]   ;;  %v380_v11 = vsel %vm360_vm0, %v1235_v9, 0  ;;  %p1263_p13 = pnand %p1262_p12, %p1414_p4 }
  0x16   : > { %1099 = vmatpush3.bf16.xpose.msra.mxu0 %v386_v3  ;;  %v517_v4 = vsel %vm360_vm0, %v1232_v2, 0  ;;  %v514_v8 = vsel %vm360_vm0, %v1234_v6, 0  ;;  %v511_v12 = vsel %vm360_vm0, %v1236_v10, 0  ;;  %1114 = vmatprep.mubr.msk.bf16.mxu0 %vm1340_vm1, %v1339_v1  ;;  %v1237_v13 = vld [vmem:[%s1621_s2 + $0x20] sm:$0xff]   ;;  %v1239_v17 = vld [vmem:[%s1621_s2 + $0x18] sm:$0xff]   ;;  %v1241_v21 = vld [vmem:[%s1621_s2 + $0x10] sm:$0xff]  }
  0x17   : > { %1119 = vmatpush3.bf16.xpose.msra.mxu1 %v517_v4  ;;  %1100 = vmatprep.subr.bf16.mxu0 %v1339_v1  ;;  %v1238_v14 = vld [vmem:[%s1622_s3 + $0x20] sm:$0xff]   ;;  %v377_v15 = vsel %vm360_vm0, %v1237_v13, 0  ;;  %v1240_v18 = vld [vmem:[%s1622_s3 + $0x18] sm:$0xff]   ;;  %v374_v19 = vsel %vm360_vm0, %v1239_v17, 0  ;;  %v1242_v22 = vld [vmem:[%s1622_s3 + $0x10] sm:$0xff]   ;;  %v371_v23 = vsel %vm360_vm0, %v1241_v21, 0  ;;  %p1264_p0 = pneg %p1263_p13 }
  0x18   : > { %1120 = vmatprep.subr.bf16.mxu1 %v1339_v1  ;;  %1134 = vmatprep.mubr.msk.bf16.mxu1 %vm1340_vm1, %v1339_v1  ;;  %v508_v16 = vsel %vm360_vm0, %v1238_v14, 0  ;;  %v505_v20 = vsel %vm360_vm0, %v1240_v18, 0  ;;  %v502_v24 = vsel %vm360_vm0, %v1242_v22, 0  ;;  %v1243_v25 = vld [vmem:[%s1621_s2 + $0x8] sm:$0xff]   ;;  %v1245_v29 = vld [vmem:[%s1621_s2] sm:$0xff]   ;;  %s277_s9 = scalar_select %p276_p11, %s1329_s21, 1 }
  0x19   : > { %v1244_v26 = vld [vmem:[%s1622_s3 + $0x8] sm:$0xff]   ;;  %v368_v27 = vsel %vm360_vm0, %v1243_v25, 0  ;;  %v1246_v30 = vld [vmem:[%s1622_s3] sm:$0xff]   ;;  %v365_v31 = vsel %vm360_vm0, %v1245_v29, 0  ;;  %v1247_v46 = vld [vmem:[%s1623_s4 + $0x38] sm:$0xff]   ;;  %vm299_vm2 = vcmask 7168  }
  0x1a   : > { %v499_v28 = vsel %vm360_vm0, %v1244_v26, 0  ;;  %v496_v32 = vsel %vm360_vm0, %v1246_v30, 0  ;;  %s1032_s10 = sshll.u32 %s277_s9, 2  ;;  %v1341_v47 = vmov -1e+30   ;;  %301 = vst.msk [vmem:[#allocation4] sm:$0xff] %vm299_vm2, %v1339_v1 }
  0x1b   : > { %s282_s13 = scalar_lea.vmem %s1619_s0, %s1032_s10  ;;  %s291_s16 = scalar_lea.vmem %s1620_s1, %s1032_s10  ;;  %300 = vst.msk [vmem:[#allocation3] sm:$0xff] %vm299_vm2, %v1341_v47  ;;  %v638_v48 = vsel %vm360_vm0, %v1247_v46, 0  ;;  %v1248_v49 = vld [vmem:[%s1623_s4 + $0x30] sm:$0xff]   ;;  %v1249_v51 = vld [vmem:[%s1623_s4 + $0x28] sm:$0xff]   ;;  %v1250_v53 = vld [vmem:[%s1623_s4 + $0x20] sm:$0xff]   ;;  %v729_v0 = vshrl.u32 %v728_v63, 7 }
  0x1c   : > { %v303_v33 = vld [vmem:[%s282_s13] sm:$0xf]  ;;  %v635_v50 = vsel %vm360_vm0, %v1248_v49, 0  ;;  %v632_v52 = vsel %vm360_vm0, %v1249_v51, 0  ;;  %v629_v54 = vsel %vm360_vm0, %v1250_v53, 0  ;;  %v1251_v55 = vld [vmem:[%s1623_s4 + $0x18] sm:$0xff]   ;;  %s935_s10 = scalar_lea.hbm %s1624_s5, %s1064_s27 }
  0x1d   : > { %v434_v34 = vld [vmem:[%s291_s16] sm:$0xf]  ;;  %v626_v56 = vsel %vm360_vm0, %v1251_v55, 0  ;;  %v1252_v57 = vld [vmem:[%s1623_s4 + $0x10] sm:$0xff]   ;;  %v1253_v59 = vld [vmem:[%s1623_s4 + $0x8] sm:$0xff]   ;;  %v734_v2 = vand.u32 127, %v728_v63 }
  0x1e   : > { %1101 = vmatpush3.bf16.xpose.msra.mxu0 %v383_v7  ;;  %v623_v58 = vsel %vm360_vm0, %v1252_v57, 0  ;;  %v620_v60 = vsel %vm360_vm0, %v1253_v59, 0  ;;  %v1254_v61 = vld [vmem:[%s1623_s4] sm:$0xff]   ;;  %vm740_vm4 = vcmask 64512   ;;  %v1342_v9 = vmov 0   ;;  %s1343_s13 = smov [#allocation6]  }
  0x1f   : > { %1121 = vmatpush3.bf16.xpose.msra.mxu1 %v514_v8  ;;  %1102 = vmatprep.subr.bf16.mxu0 %v1339_v1  ;;  %v617_v62 = vsel %vm360_vm0, %v1254_v61, 0  ;;  %vm737_vm3 = vcmp.le.s32.totalorder %v734_v2, %v729_v0  ;;  %vm775_vm5 = vcmask 1043456   ;;  %s1265_s14 = sshll.u32 %s1343_s13, 4  ;;  %s1266_s14 = int_to_ptr.vmem [resolvable:$false] %s1265_s14 }
  0x20   : > { %1122 = vmatprep.subr.bf16.mxu1 %v1339_v1  ;;  %1229 = vset.pattern.permute.xlu0 %v1342_v9  ;;  %s1267_s21 = scalar_lea.vmem %s1266_s14, 256  ;;  %p1268_p1 = scmp.lt.s32.totalorder %s938_s7, %s1266_s14 }
  0x21   : > { %1230 = vset.pattern.permute.xlu1 %v1342_v9  ;;  %p1269_p2 = scmp.lt.s32.totalorder %s1267_s21, %s1261_s12 }
  0x22   : > { %v739_v10 = vld [vmem:[#allocation3] sm:$0xff] }
  0x23   : > { %p1270_p3 = por %p1269_p2, %p1268_p1 }
  0x25   : > { %p1271_p5 = pnand %p1270_p3, %p1264_p0 }
  0x26   : > { %1103 = vmatpush3.bf16.xpose.msra.mxu0 %v380_v11 }
  0x27   : > { %1123 = vmatpush3.bf16.xpose.msra.mxu1 %v511_v12  ;;  %1104 = vmatprep.subr.bf16.mxu0 %v1339_v1 }
  0x28   : > { %1124 = vmatprep.subr.bf16.mxu1 %v1339_v1 }
  0x2e   : > { %1105 = vmatpush3.bf16.xpose.msra.mxu0 %v377_v15 }
  0x2f   : > { %1125 = vmatpush3.bf16.xpose.msra.mxu1 %v508_v16  ;;  %1106 = vmatprep.subr.bf16.mxu0 %v1339_v1 }
  0x30   : > { %1126 = vmatprep.subr.bf16.mxu1 %v1339_v1 }
  0x36   : > { %1107 = vmatpush3.bf16.xpose.msra.mxu0 %v374_v19 }
  0x37   : > { %1127 = vmatpush3.bf16.xpose.msra.mxu1 %v505_v20  ;;  %1108 = vmatprep.subr.bf16.mxu0 %v1339_v1 }
  0x38   : > { %1128 = vmatprep.subr.bf16.mxu1 %v1339_v1 }
  0x3e   : > { %1109 = vmatpush3.bf16.xpose.msra.mxu0 %v371_v23 }
  0x3f   : > { %1129 = vmatpush3.bf16.xpose.msra.mxu1 %v502_v24  ;;  %1110 = vmatprep.subr.bf16.mxu0 %v1339_v1 }
  0x40   : > { %1130 = vmatprep.subr.bf16.mxu1 %v1339_v1 }
  0x46   : > { %1111 = vmatpush3.bf16.xpose.msra.mxu0 %v368_v27 }
  0x47   : > { %1131 = vmatpush3.bf16.xpose.msra.mxu1 %v499_v28  ;;  %1112 = vmatprep.subr.bf16.mxu0 %v1339_v1  ;;  %v756_v28 = vld [vmem:[#allocation4] sm:$0xff] }
  0x48   : > { %1132 = vmatprep.subr.bf16.mxu1 %v1339_v1 }
  0x4e   : > { %1113 = vmatpush3.bf16.xpose.msra.mxu0 %v365_v31 }
  0x4f   : > { %1133 = vmatpush3.bf16.xpose.msra.mxu1 %v496_v32  ;;  %1138 = vmatprep.subr.bf16.mxu0 %v1339_v1 }
  0x50   : > { %1158 = vmatprep.subr.bf16.mxu1 %v1339_v1 }
  0x55   : > { %1115 = vmatmul.mubr.msk.bf16.vlgmr.msra.gmra.mxu0 %vm360_vm0, %v303_v33 }
  0x56   : > { %1135 = vmatmul.mubr.msk.bf16.vlgmr.msra.gmra.mxu1 %vm360_vm0, %v434_v34  ;;  %1154 = vmatprep.mubr.msk.bf16.mxu0 %vm1340_vm1, %v1339_v1 }
  0x57   : > { %1160 = vmatprep.mubr.msk.bf16.mxu1 %vm1340_vm1, %v1339_v1  ;;  %1139 = vmatpush3.bf16.xpose.msra.mxu0 %v638_v48 }
  0x58   : > { %1140 = vmatprep.subr.bf16.mxu0 %v1339_v1 }
  0x5f   : > { %1141 = vmatpush3.bf16.xpose.msra.mxu0 %v635_v50 }
  0x60   : > { %1142 = vmatprep.subr.bf16.mxu0 %v1339_v1 }
  0x67   : > { %1143 = vmatpush3.bf16.xpose.msra.mxu0 %v632_v52 }
  0x68   : > { %1144 = vmatprep.subr.bf16.mxu0 %v1339_v1 }
  0x6f   : > { %1145 = vmatpush3.bf16.xpose.msra.mxu0 %v629_v54 }
  0x70   : > { %1146 = vmatprep.subr.bf16.mxu0 %v1339_v1 }
  0x77   : > { %1147 = vmatpush3.bf16.xpose.msra.mxu0 %v626_v56 }
  0x78   : > { %1148 = vmatprep.subr.bf16.mxu0 %v1339_v1 }
  0x7f   : > { %1149 = vmatpush3.bf16.xpose.msra.mxu0 %v623_v58 }
  0x80   : > { %1150 = vmatprep.subr.bf16.mxu0 %v1339_v1 }
  0x87   : > { %1151 = vmatpush3.bf16.xpose.msra.mxu0 %v620_v60 }
  0x88   : > { %1152 = vmatprep.subr.bf16.mxu0 %v1339_v1 }
  0x8f   : > { %1153 = vmatpush3.bf16.xpose.msra.mxu0 %v617_v62 }
  0x96   : > { %1155 = vmatmul.mubr.msk.bf16.vlgmr.msra.gmra.mxu0 %vm360_vm0, %v434_v34 }
 0x115   : > { %v422_v35 = vpop.f32.mrf.mxu0 }
 0x116   : > { %v428_v36 = vpack.c.bf16 %v422_v35, %v422_v35  ;;  %v553_v37 = vpop.f32.mrf.mxu1 }
 0x117   : > { %v559_v38 = vpack.c.bf16 %v553_v37, %v553_v37  ;;  %v1116_v39 = vpop.f32.mrf.mxu0 }
 0x118   : > { %429 = vst [vmem:[#allocation2] sm:$0xf] %v428_v36  ;;  %v1136_v40 = vpop.f32.mrf.mxu1 }
 0x119   : > { %1159 = vmatpush3.bf16.xpose.msra.mxu1 %v559_v38  ;;  %v425_v41 = vpop.f32.mrf.mxu0 }
 0x11a   : > { %v556_v42 = vpop.f32.mrf.mxu1  ;;  %1164 = vmatprep.subr.bf16.mxu1 %v1339_v1 }
 0x11b   : > { %v1117_v43 = vpop.f32.mrf.mxu0 }
 0x11c   : > { %v1137_v44 = vpop.f32.mrf.mxu1 }
 0x11f   : > { %v681_v45 = vld [vmem:[#allocation2] sm:$0xf] }
 0x120   : > { %1161 = vmatmul.mubr.bf16.vlgmr.msra.gmra.mxu1 %v681_v45 }
 0x121   : > { %1166 = vmatprep.mubr.msk.bf16.mxu1 %vm1340_vm1, %v1339_v1 }
 0x156   : > { %v674_v14 = vpop.f32.mrf.mxu0 }
 0x157   : > { %v680_v15 = vpack.c.bf16 %v674_v14, %v674_v14 }
 0x158   : > { %v1156_v16 = vpop.f32.mrf.mxu0 }
 0x159   : > { %v777_v17 = vsel %vm775_vm5, %v680_v15, 0 }
 0x15a   : > { %1165 = vmatpush3.bf16.msra.mxu1 %v777_v17  ;;  %v677_v18 = vpop.f32.mrf.mxu0 }
 0x15c   : > { %v1157_v19 = vpop.f32.mrf.mxu0 }
 0x1e0   : > { %v716_v3 = vpop.f32.mrf.mxu1 }
 0x1e1   : > { %v722_v4 = vmul.f32 0.25, %v716_v3 }
 0x1e2   : > { %v1162_v5 = vpop.f32.mrf.mxu1 }
 0x1e3   : > { %v738_v6 = vsel %vm737_vm3, %v722_v4, -1e+30 }
 0x1e4   : > { %v719_v7 = vpop.f32.mrf.mxu1  ;;  %v741_v1 = vsel %vm740_vm4, %v738_v6, -inf }
 0x1e5   : > { %742 = vmax.xlane.f32.xlu0 %v741_v1 }
 0x1e6   : > { %v1163_v8 = vpop.f32.mrf.mxu1 }
 0x26e   : > { %v743_v11 = vpop.xlane.xlu0 %742 }
 0x26f   : > { %v744_v12 = vmax.f32 %v739_v10, %v743_v11 }
 0x271   : > { %v745_v13 = vsub.f32 %v739_v10, %v744_v12  ;;  %821 = vst.msk [vmem:[#allocation3] sm:$0xff] %vm299_vm2, %v744_v12  ;;  %750 = vperm.xlu0 %1229, %v744_v12  }
 0x273   : > { %v746_v24 = vmul.f32 1.442695, %v745_v13 }
 0x2ec   : > { %v751_v20 = vpop.permute.xlu0 %750 }
 0x2ed   : > { %v753_v21 = vsub.f32 %v738_v6, %v751_v20 }
 0x2ef   : > { %v754_v22 = vmul.f32 1.442695, %v753_v21 }
 0x2f1   : > { %1255 = vpow2.f32 %v754_v22 }
 0x2f2   : > { %1257 = vpow2.f32 %v746_v24 }
 0x2fe   : > { %v1256_v23 = vpop.eup %1255 }
 0x2ff   : > { %v758_v25 = vsel %vm740_vm4, %v1256_v23, 0.0  ;;  %v771_v26 = vpack.c.bf16 %v1256_v23, %v1256_v23  ;;  %v1258_v27 = vpop.eup %1257 }
 0x300   : > { %759 = vadd.xlane.f32.xlu1 %v758_v25  ;;  %v757_v29 = vmul.f32 %v1258_v27, %v756_v28 }
 0x301   : > { %1167 = vmatmul.mubr.msk.bf16.vlgmr.msra.gmra.mxu1 %vm740_vm4, %v771_v26 }
 0x311   : > { %767 = vperm.xlu1 %1230, %v1258_v27  }
 0x389   : > { %v760_v30 = vpop.xlane.xlu1 %759 }
 0x38a   : > { %v761_v31 = vadd.f32 %v760_v30, %v757_v29 }
 0x38c   : > { %763 = vst.msk [vmem:[#allocation4] sm:$0xff] %vm299_vm2, %v761_v31 }
 0x38d   : > { %v768_v38 = vpop.permute.xlu1 %767 }
 0x38e   : > { %v770_v39 = vmul.f32 0.0, %v768_v38 }
 0x393   : > { %v912_v32 = vld [vmem:[#allocation4] sm:$0xff] }
 0x394   : > { %1259 = vrcp.f32 %v912_v32 }
 0x3a1   : > { %v1260_v33 = vpop.eup %1259 }
 0x3a2   : > { %917 = vperm.xlu1 %1230, %v1260_v33  }
 0x3c1   : > { %v813_v34 = vpop.f32.mrf.mxu1 }
 0x3c2   : > { %v819_v40 = vadd.f32 %v813_v34, %v770_v39 }
 0x3c3   : > { %v1168_v35 = vpop.f32.mrf.mxu1 }
 0x3c5   : > { %v816_v36 = vpop.f32.mrf.mxu1 }
 0x3c7   : > { %v1169_v37 = vpop.f32.mrf.mxu1 }
 0x41d   : > { %v918_v41 = vpop.permute.xlu1 %917 }
 0x41e   : > { %v920_v42 = vmul.f32 %v918_v41, %v819_v40 }
 0x420   : > { %921 = vst [vmem:[%s275_s29] sm:$0xff] %v920_v42 }
 0x421   : > { %1274 = shalt.err (!%p1271_p5)
}
 0x422   : > { %s1275_s15 = scalar_lea.hbm %s935_s10, 128  ;;  %s1279_s24 = scalar_lea.hbm %s1624_s5, 256 }
 0x423   : > { %p1276_p6 = scmp.ne.s32.totalorder %s935_s10, %s1275_s15  ;;  %p1280_p10 = scmp.lt.s32.totalorder %s935_s10, %s1624_s5 }
 0x424   : > { %p1281_p11 = scmp.lt.s32.totalorder %s1279_s24, %s1275_s15 }
 0x425   : > { %p1277_p7 = pnand %p1276_p6, %p1414_p4 }
 0x426   : > { %p1282_p12 = por %p1281_p11, %p1280_p10 }
 0x427   : > { %p1278_p9 = pneg %p1277_p7 }
 0x429   : > { %p1283_p13 = pnand %p1282_p12, %p1278_p9 }
 0x42b   : > { %1286 = shalt.err (!%p1283_p13)
}
 0x42c   : > { %1170 = dma.vmem_to_hbm [thread:$0]  (%p1414_p4), %s938_s7, 128, %s935_s10, %s923_s11  }
 0x42d PF: > { %p1176_p0 = scmp.ge.s32.totalorder %s1337_s23, 2  ;;  %s949_s29 = sand.u32 1, %s1317_s18  }
 0x42e   : > { %s950_s8 = scalar_lea.sflag [#allocation7], %s949_s29 }
 0x42f   : > { %p1173_p1 = pnand %p1176_p0, %p1421_p8 }
 0x431   : > { %p1174_p2 = pneg %p1173_p1 }
 0x433   : > { %1312 = dma.done.wait (%p1174_p2), %s950_s8, 128  }
 0x434   : > { %1314 = vsyncadd (%p1174_p2), %s950_s8, 4294967168  ;;  %s18_s23 = sadd.s32 1, %s1337_s23   ;;  %s1627_s18 = smov %s1321_s19 }
 0x435   : > { %p15_p3 = scmp.ge.s32.totalorder %s18_s23, 4   ;;  %s1628_s19 = smov %s1325_s20 }
 0x436   : > { %s1629_s20 = smov %s1427_s6  ;;  %s1630_s21 = smov %s1333_s22 }
 0x437   : > { %s1631_s22 = smov %s1633_s26  ;;  %17 = sbr.rel (!%p15_p3) target bundleno = 4 (0x4), region = 98 }
 0x43c   :  { %955 = vsyncpa [#allocation7], 1 }
 0x43d   :  { %957 = vsyncpa [#allocation7 + $0x1], 1 }

</bundles_post_ra>
